<compile_context>
chip_gen: v5e
topology: v5e:2x2
jax: 0.10.0
libtpu: 0.0.40
codegen_flags: <defaults>
</compile_context>

<pallas_src>
import jax
import jax.numpy as jnp
from jax.experimental import pallas as pl
from jax.experimental.pallas import tpu as pltpu

BN_EPS = 1e-5


def fused_conv1x1_hswish_bn_kernel(x_ref, w_ref, b_ref, g_ref, beta_ref,
                                   o_ref, xp_ref):
    # x_ref    : (N, Cin, H, W)     f32 VMEM  -- unpadded NCHW input
    # w_ref    : (Cout*Cin,)        f32 SMEM  -- 1x1 conv weights, (co, ci) row-major
    # b_ref    : (Cout,)            f32 SMEM  -- conv bias
    # g_ref    : (Cout,)            f32 SMEM  -- BN gamma
    # beta_ref : (Cout,)            f32 SMEM  -- BN beta
    # o_ref    : (N, Cout, Ho, Wo)  f32 VMEM  -- padded NCHW output
    # xp_ref   : (N, Cin, Ho, Wo)   f32 VMEM scratch -- zero-padded input
    n, cin, h, w = x_ref.shape
    _, cout, ho, wo = o_ref.shape

    total = n * ho * wo                  # positions per channel (border incl.)
    inv_total6 = 1.0 / (6.0 * total)     # folds hardswish /6 into the mean
    inv_total36 = 1.0 / (36.0 * total)   # folds (1/6)^2 into E[x^2]
    inv6 = 1.0 / 6.0

    # Zero-padded input, built once in VMEM scratch.  With a 1x1 kernel the
    # conv over the padded domain reproduces PyTorch's padding=1 output
    # (border positions see x=0 -> conv value == bias) with no special cases.
    xp_ref[...] = jnp.zeros_like(xp_ref)
    xp_ref[:, :, pl.ds(1, h), pl.ds(1, w)] = x_ref[...]
    xp = xp_ref[...]                     # (N, Cin, Ho, Wo), loaded once

    for co in range(cout):
        # ---- 1x1 conv: Cin scalar-broadcast FMAs on the VPU ----
        v1 = xp[:, 0] * w_ref[co * cin + 0]
        for k in range(1, cin):
            v1 = v1 + xp[:, k] * w_ref[co * cin + k]
        v1 = v1 + b_ref[co]                                   # (N, Ho, Wo)

        # ---- u = 6 * hardswish-like value; the /6 lives in the BN constants ----
        u = v1 * jnp.clip(v1 + 3.0, 0.0, 6.0)                 # (N, Ho, Wo)

        # ---- BatchNorm (training-mode batch statistics), single pass ----
        s1 = jnp.sum(u, keepdims=True)                        # (1, 1, 1)
        s2 = jnp.sum(u * u, keepdims=True)                    # (1, 1, 1)
        mean = s1 * inv_total6            # mean of u/6
        ex2 = s2 * inv_total36            # E[(u/6)^2]
        var = ex2 - mean * mean           # biased batch variance
        inv_std = jax.lax.rsqrt(var + BN_EPS)
        scale = g_ref[co] * inv_std                           # (1, 1, 1)
        shift = beta_ref[co] - mean * scale                   # (1, 1, 1)

        # ---- one dense full-plane store per channel (single write per elem) ----
        o_ref[:, co] = u * (scale * inv6) + shift


def model_forward(x_nchw, conv_w, conv_b, bn_gamma, bn_beta):
    """x_nchw: (N, 3, H, W) float32.  Returns (N, 3, H+2, W+2) float32."""
    N, Cin, H, W = x_nchw.shape
    Cout = conv_w.shape[0]
    Ho, Wo = H + 2, W + 2

    # Contiguous reshape only (free); no pad / transpose / concat in the wrapper.
    w_flat = conv_w.reshape(Cout * Cin).astype(jnp.float32)

    return pl.pallas_call(
        fused_conv1x1_hswish_bn_kernel,
        out_shape=jax.ShapeDtypeStruct((N, Cout, Ho, Wo), jnp.float32),
        in_specs=[
            pl.BlockSpec(memory_space=pltpu.MemorySpace.VMEM),   # x
            pl.BlockSpec(memory_space=pltpu.MemorySpace.SMEM),   # conv weights
            pl.BlockSpec(memory_space=pltpu.MemorySpace.SMEM),   # conv bias
            pl.BlockSpec(memory_space=pltpu.MemorySpace.SMEM),   # BN gamma
            pl.BlockSpec(memory_space=pltpu.MemorySpace.SMEM),   # BN beta
        ],
        out_specs=pl.BlockSpec(memory_space=pltpu.MemorySpace.VMEM),
        scratch_shapes=[pltpu.VMEM((N, Cin, Ho, Wo), jnp.float32)],
    )(x_nchw.astype(jnp.float32), w_flat,
      conv_b.astype(jnp.float32), bn_gamma.astype(jnp.float32),
      bn_beta.astype(jnp.float32))


model_forward = jax.jit(model_forward)


def _reference(x, conv_w, conv_b, gamma, beta):
    """Pure-JAX reference of the PyTorch forward (groups=1 substitution)."""
    Cout, Cin = conv_w.shape[0], conv_w.shape[1]
    w = conv_w.reshape(Cout, Cin)
    xp = jnp.pad(x, ((0, 0), (0, 0), (1, 1), (1, 1)))
    v1 = jnp.einsum('oc,nchw->nohw', w, xp) + conv_b[None, :, None, None]
    v6 = v1 * jnp.clip(v1 + 3.0, 0.0, 6.0) / 6.0
    mean = v6.mean(axis=(0, 2, 3), keepdims=True)
    var = ((v6 - mean) ** 2).mean(axis=(0, 2, 3), keepdims=True)
    return ((v6 - mean) * jax.lax.rsqrt(var + BN_EPS)
            * gamma[None, :, None, None] + beta[None, :, None, None])


if __name__ == "__main__":
    key = jax.random.PRNGKey(0)
    k_x, k_w, k_b = jax.random.split(key, 3)

    N, Cin, H, W = 2, 3, 16, 16
    Cout = 3

    # Deterministic parameter init (Conv2d-like fan_in scaling); BN defaults.
    fan_in = Cin * 1 * 1
    bound = 1.0 / (fan_in ** 0.5)
    conv_w = jax.random.uniform(k_w, (Cout, Cin, 1, 1), jnp.float32,
                                -bound, bound)
    conv_b = jax.random.uniform(k_b, (Cout,), jnp.float32, -bound, bound)
    bn_gamma = jnp.ones((Cout,), jnp.float32)
    bn_beta = jnp.zeros((Cout,), jnp.float32)

    x1 = jax.random.normal(k_x, (N, Cin, H, W), jnp.float32)

    out = model_forward(x1, conv_w, conv_b, bn_gamma, bn_beta)
    jax.block_until_ready(out)
    assert out.shape == (N, Cout, H + 2, W + 2), out.shape

    ref = _reference(x1, conv_w, conv_b, bn_gamma, bn_beta)
    max_err = float(jnp.max(jnp.abs(out - ref)))
    assert max_err < 1e-4, f"max abs error vs reference: {max_err}"

    print("KERNEL_OK")
</pallas_src>

<mosaic_0001>
module attributes {stable_mosaic.version = 11 : i64} {
  func.func @fused_conv1x1_hswish_bn_kernel(%arg0: memref<2x3x16x16xf32, #tpu.memory_space<vmem>>, %arg1: memref<9xf32, #tpu.memory_space<smem>>, %arg2: memref<3xf32, #tpu.memory_space<smem>>, %arg3: memref<3xf32, #tpu.memory_space<smem>>, %arg4: memref<3xf32, #tpu.memory_space<smem>>, %arg5: memref<2x3x18x18xf32, #tpu.memory_space<vmem>>, %arg6: memref<2x3x18x18xf32, #tpu.memory_space<vmem>>) attributes {dimension_semantics = [], scalar_prefetch = 0 : i64, scratch_operands = 1 : i64, tpu.core_type = #tpu.core_type<tc>} {
    %cst = arith.constant 0.000000e+00 : f32
    %0 = vector.broadcast %cst : f32 to vector<2x3x18x18xf32>
    %c0 = arith.constant 0 : index
    %c0_0 = arith.constant 0 : index
    %c0_1 = arith.constant 0 : index
    %c0_2 = arith.constant 0 : index
    %1 = vector.load %arg6[%c0, %c0_0, %c0_1, %c0_2] : memref<2x3x18x18xf32, #tpu.memory_space<vmem>>, vector<2x3x18x18xf32>
    tpu.vector_store %arg6[%c0, %c0_0, %c0_1, %c0_2], %0 {strides = array<i32>} : memref<2x3x18x18xf32, #tpu.memory_space<vmem>>, vector<2x3x18x18xf32>,
    %c0_3 = arith.constant 0 : index
    %c0_4 = arith.constant 0 : index
    %c0_5 = arith.constant 0 : index
    %c0_6 = arith.constant 0 : index
    %2 = vector.load %arg0[%c0_3, %c0_4, %c0_5, %c0_6] : memref<2x3x16x16xf32, #tpu.memory_space<vmem>>, vector<2x3x16x16xf32>
    %c0_7 = arith.constant 0 : index
    %c0_8 = arith.constant 0 : index
    %c1 = arith.constant 1 : index
    %c1_9 = arith.constant 1 : index
    %3 = vector.load %arg6[%c0_7, %c0_8, %c1, %c1_9] : memref<2x3x18x18xf32, #tpu.memory_space<vmem>>, vector<2x3x16x16xf32>
    tpu.vector_store %arg6[%c0_7, %c0_8, %c1, %c1_9], %2 {strides = array<i32>} : memref<2x3x18x18xf32, #tpu.memory_space<vmem>>, vector<2x3x16x16xf32>,
    %c0_10 = arith.constant 0 : index
    %c0_11 = arith.constant 0 : index
    %c0_12 = arith.constant 0 : index
    %c0_13 = arith.constant 0 : index
    %4 = vector.load %arg6[%c0_10, %c0_11, %c0_12, %c0_13] : memref<2x3x18x18xf32, #tpu.memory_space<vmem>>, vector<2x3x18x18xf32>
    %5 = vector.extract_strided_slice %4 {offsets = [0, 0, 0, 0], sizes = [2, 1, 18, 18], strides = [1, 1, 1, 1]} : vector<2x3x18x18xf32> to vector<2x1x18x18xf32>
    %6 = vector.shape_cast %5 : vector<2x1x18x18xf32> to vector<2x18x18xf32>
    %c0_14 = arith.constant 0 : index
    %7 = memref.load %arg1[%c0_14] : memref<9xf32, #tpu.memory_space<smem>>
    %8 = vector.broadcast %7 : f32 to vector<2x18x18xf32>
    %9 = arith.mulf %6, %8 : vector<2x18x18xf32>
    %10 = vector.extract_strided_slice %4 {offsets = [0, 1, 0, 0], sizes = [2, 1, 18, 18], strides = [1, 1, 1, 1]} : vector<2x3x18x18xf32> to vector<2x1x18x18xf32>
    %11 = vector.shape_cast %10 : vector<2x1x18x18xf32> to vector<2x18x18xf32>
    %c1_15 = arith.constant 1 : index
    %12 = memref.load %arg1[%c1_15] : memref<9xf32, #tpu.memory_space<smem>>
    %13 = vector.broadcast %12 : f32 to vector<2x18x18xf32>
    %14 = arith.mulf %11, %13 : vector<2x18x18xf32>
    %15 = arith.addf %9, %14 : vector<2x18x18xf32>
    %16 = vector.extract_strided_slice %4 {offsets = [0, 2, 0, 0], sizes = [2, 1, 18, 18], strides = [1, 1, 1, 1]} : vector<2x3x18x18xf32> to vector<2x1x18x18xf32>
    %17 = vector.shape_cast %16 : vector<2x1x18x18xf32> to vector<2x18x18xf32>
    %c2 = arith.constant 2 : index
    %18 = memref.load %arg1[%c2] : memref<9xf32, #tpu.memory_space<smem>>
    %19 = vector.broadcast %18 : f32 to vector<2x18x18xf32>
    %20 = arith.mulf %17, %19 : vector<2x18x18xf32>
    %21 = arith.addf %15, %20 : vector<2x18x18xf32>
    %c0_16 = arith.constant 0 : index
    %22 = memref.load %arg2[%c0_16] : memref<3xf32, #tpu.memory_space<smem>>
    %23 = vector.broadcast %22 : f32 to vector<2x18x18xf32>
    %24 = arith.addf %21, %23 : vector<2x18x18xf32>
    %cst_17 = arith.constant 3.000000e+00 : f32
    %25 = vector.broadcast %cst_17 : f32 to vector<2x18x18xf32>
    %26 = arith.addf %24, %25 : vector<2x18x18xf32>
    %cst_18 = arith.constant 0.000000e+00 : f32
    %cst_19 = arith.constant 6.000000e+00 : f32
    %27 = vector.broadcast %cst_18 : f32 to vector<2x18x18xf32>
    %28 = arith.maximumf %27, %26 : vector<2x18x18xf32>
    %29 = vector.broadcast %cst_19 : f32 to vector<2x18x18xf32>
    %30 = arith.minimumf %29, %28 : vector<2x18x18xf32>
    %31 = arith.mulf %24, %30 : vector<2x18x18xf32>
    %32 = vector.shape_cast %31 : vector<2x18x18xf32> to vector<1x2x18x18xf32>
    %cst_20 = arith.constant dense<0.000000e+00> : vector<1xf32>
    %33 = vector.multi_reduction <add>, %32, %cst_20 [1, 2, 3] : vector<1x2x18x18xf32> to vector<1xf32>
    %34 = vector.shape_cast %33 : vector<1xf32> to vector<1x1x1x1xf32>
    %35 = vector.extract %34[0, 0, 0, 0] : f32 from vector<1x1x1x1xf32>
    %36 = vector.broadcast %35 : f32 to vector<1x1x1xf32>
    %37 = arith.mulf %31, %31 : vector<2x18x18xf32>
    %38 = vector.shape_cast %37 : vector<2x18x18xf32> to vector<1x2x18x18xf32>
    %cst_21 = arith.constant dense<0.000000e+00> : vector<1xf32>
    %39 = vector.multi_reduction <add>, %38, %cst_21 [1, 2, 3] : vector<1x2x18x18xf32> to vector<1xf32>
    %40 = vector.shape_cast %39 : vector<1xf32> to vector<1x1x1x1xf32>
    %41 = vector.extract %40[0, 0, 0, 0] : f32 from vector<1x1x1x1xf32>
    %42 = vector.broadcast %41 : f32 to vector<1x1x1xf32>
    %cst_22 = arith.constant 2.57201638E-4 : f32
    %43 = vector.broadcast %cst_22 : f32 to vector<1x1x1xf32>
    %44 = arith.mulf %36, %43 : vector<1x1x1xf32>
    %cst_23 = arith.constant 4.28669409E-5 : f32
    %45 = vector.broadcast %cst_23 : f32 to vector<1x1x1xf32>
    %46 = arith.mulf %42, %45 : vector<1x1x1xf32>
    %47 = arith.mulf %44, %44 : vector<1x1x1xf32>
    %48 = arith.subf %46, %47 : vector<1x1x1xf32>
    %cst_24 = arith.constant 9.99999974E-6 : f32
    %49 = vector.broadcast %cst_24 : f32 to vector<1x1x1xf32>
    %50 = arith.addf %48, %49 : vector<1x1x1xf32>
    %51 = math.rsqrt %50 : vector<1x1x1xf32>
    %c0_25 = arith.constant 0 : index
    %52 = memref.load %arg3[%c0_25] : memref<3xf32, #tpu.memory_space<smem>>
    %53 = vector.broadcast %52 : f32 to vector<1x1x1xf32>
    %54 = arith.mulf %53, %51 : vector<1x1x1xf32>
    %c0_26 = arith.constant 0 : index
    %55 = memref.load %arg4[%c0_26] : memref<3xf32, #tpu.memory_space<smem>>
    %56 = arith.mulf %44, %54 : vector<1x1x1xf32>
    %57 = vector.broadcast %55 : f32 to vector<1x1x1xf32>
    %58 = arith.subf %57, %56 : vector<1x1x1xf32>
    %cst_27 = arith.constant 0.166666672 : f32
    %59 = vector.broadcast %cst_27 : f32 to vector<1x1x1xf32>
    %60 = arith.mulf %54, %59 : vector<1x1x1xf32>
    %61 = vector.broadcast %60 : vector<1x1x1xf32> to vector<2x18x18xf32>
    %62 = arith.mulf %31, %61 : vector<2x18x18xf32>
    %63 = vector.broadcast %58 : vector<1x1x1xf32> to vector<2x18x18xf32>
    %64 = arith.addf %62, %63 : vector<2x18x18xf32>
    %c0_28 = arith.constant 0 : index
    %c0_29 = arith.constant 0 : index
    %c0_30 = arith.constant 0 : index
    %c0_31 = arith.constant 0 : index
    %65 = vector.load %arg5[%c0_28, %c0_29, %c0_30, %c0_31] : memref<2x3x18x18xf32, #tpu.memory_space<vmem>>, vector<2x1x18x18xf32>
    %66 = vector.shape_cast %65 : vector<2x1x18x18xf32> to vector<2x18x18xf32>
    %67 = vector.shape_cast %64 : vector<2x18x18xf32> to vector<2x1x18x18xf32>
    tpu.vector_store %arg5[%c0_28, %c0_29, %c0_30, %c0_31], %67 {strides = array<i32>} : memref<2x3x18x18xf32, #tpu.memory_space<vmem>>, vector<2x1x18x18xf32>,
    %68 = vector.extract_strided_slice %4 {offsets = [0, 0, 0, 0], sizes = [2, 1, 18, 18], strides = [1, 1, 1, 1]} : vector<2x3x18x18xf32> to vector<2x1x18x18xf32>
    %69 = vector.shape_cast %68 : vector<2x1x18x18xf32> to vector<2x18x18xf32>
    %c3 = arith.constant 3 : index
    %70 = memref.load %arg1[%c3] : memref<9xf32, #tpu.memory_space<smem>>
    %71 = vector.broadcast %70 : f32 to vector<2x18x18xf32>
    %72 = arith.mulf %69, %71 : vector<2x18x18xf32>
    %73 = vector.extract_strided_slice %4 {offsets = [0, 1, 0, 0], sizes = [2, 1, 18, 18], strides = [1, 1, 1, 1]} : vector<2x3x18x18xf32> to vector<2x1x18x18xf32>
    %74 = vector.shape_cast %73 : vector<2x1x18x18xf32> to vector<2x18x18xf32>
    %c4 = arith.constant 4 : index
    %75 = memref.load %arg1[%c4] : memref<9xf32, #tpu.memory_space<smem>>
    %76 = vector.broadcast %75 : f32 to vector<2x18x18xf32>
    %77 = arith.mulf %74, %76 : vector<2x18x18xf32>
    %78 = arith.addf %72, %77 : vector<2x18x18xf32>
    %79 = vector.extract_strided_slice %4 {offsets = [0, 2, 0, 0], sizes = [2, 1, 18, 18], strides = [1, 1, 1, 1]} : vector<2x3x18x18xf32> to vector<2x1x18x18xf32>
    %80 = vector.shape_cast %79 : vector<2x1x18x18xf32> to vector<2x18x18xf32>
    %c5 = arith.constant 5 : index
    %81 = memref.load %arg1[%c5] : memref<9xf32, #tpu.memory_space<smem>>
    %82 = vector.broadcast %81 : f32 to vector<2x18x18xf32>
    %83 = arith.mulf %80, %82 : vector<2x18x18xf32>
    %84 = arith.addf %78, %83 : vector<2x18x18xf32>
    %c1_32 = arith.constant 1 : index
    %85 = memref.load %arg2[%c1_32] : memref<3xf32, #tpu.memory_space<smem>>
    %86 = vector.broadcast %85 : f32 to vector<2x18x18xf32>
    %87 = arith.addf %84, %86 : vector<2x18x18xf32>
    %cst_33 = arith.constant 3.000000e+00 : f32
    %88 = vector.broadcast %cst_33 : f32 to vector<2x18x18xf32>
    %89 = arith.addf %87, %88 : vector<2x18x18xf32>
    %cst_34 = arith.constant 0.000000e+00 : f32
    %cst_35 = arith.constant 6.000000e+00 : f32
    %90 = vector.broadcast %cst_34 : f32 to vector<2x18x18xf32>
    %91 = arith.maximumf %90, %89 : vector<2x18x18xf32>
    %92 = vector.broadcast %cst_35 : f32 to vector<2x18x18xf32>
    %93 = arith.minimumf %92, %91 : vector<2x18x18xf32>
    %94 = arith.mulf %87, %93 : vector<2x18x18xf32>
    %95 = vector.shape_cast %94 : vector<2x18x18xf32> to vector<1x2x18x18xf32>
    %cst_36 = arith.constant dense<0.000000e+00> : vector<1xf32>
    %96 = vector.multi_reduction <add>, %95, %cst_36 [1, 2, 3] : vector<1x2x18x18xf32> to vector<1xf32>
    %97 = vector.shape_cast %96 : vector<1xf32> to vector<1x1x1x1xf32>
    %98 = vector.extract %97[0, 0, 0, 0] : f32 from vector<1x1x1x1xf32>
    %99 = vector.broadcast %98 : f32 to vector<1x1x1xf32>
    %100 = arith.mulf %94, %94 : vector<2x18x18xf32>
    %101 = vector.shape_cast %100 : vector<2x18x18xf32> to vector<1x2x18x18xf32>
    %cst_37 = arith.constant dense<0.000000e+00> : vector<1xf32>
    %102 = vector.multi_reduction <add>, %101, %cst_37 [1, 2, 3] : vector<1x2x18x18xf32> to vector<1xf32>
    %103 = vector.shape_cast %102 : vector<1xf32> to vector<1x1x1x1xf32>
    %104 = vector.extract %103[0, 0, 0, 0] : f32 from vector<1x1x1x1xf32>
    %105 = vector.broadcast %104 : f32 to vector<1x1x1xf32>
    %cst_38 = arith.constant 2.57201638E-4 : f32
    %106 = vector.broadcast %cst_38 : f32 to vector<1x1x1xf32>
    %107 = arith.mulf %99, %106 : vector<1x1x1xf32>
    %cst_39 = arith.constant 4.28669409E-5 : f32
    %108 = vector.broadcast %cst_39 : f32 to vector<1x1x1xf32>
    %109 = arith.mulf %105, %108 : vector<1x1x1xf32>
    %110 = arith.mulf %107, %107 : vector<1x1x1xf32>
    %111 = arith.subf %109, %110 : vector<1x1x1xf32>
    %cst_40 = arith.constant 9.99999974E-6 : f32
    %112 = vector.broadcast %cst_40 : f32 to vector<1x1x1xf32>
    %113 = arith.addf %111, %112 : vector<1x1x1xf32>
    %114 = math.rsqrt %113 : vector<1x1x1xf32>
    %c1_41 = arith.constant 1 : index
    %115 = memref.load %arg3[%c1_41] : memref<3xf32, #tpu.memory_space<smem>>
    %116 = vector.broadcast %115 : f32 to vector<1x1x1xf32>
    %117 = arith.mulf %116, %114 : vector<1x1x1xf32>
    %c1_42 = arith.constant 1 : index
    %118 = memref.load %arg4[%c1_42] : memref<3xf32, #tpu.memory_space<smem>>
    %119 = arith.mulf %107, %117 : vector<1x1x1xf32>
    %120 = vector.broadcast %118 : f32 to vector<1x1x1xf32>
    %121 = arith.subf %120, %119 : vector<1x1x1xf32>
    %cst_43 = arith.constant 0.166666672 : f32
    %122 = vector.broadcast %cst_43 : f32 to vector<1x1x1xf32>
    %123 = arith.mulf %117, %122 : vector<1x1x1xf32>
    %124 = vector.broadcast %123 : vector<1x1x1xf32> to vector<2x18x18xf32>
    %125 = arith.mulf %94, %124 : vector<2x18x18xf32>
    %126 = vector.broadcast %121 : vector<1x1x1xf32> to vector<2x18x18xf32>
    %127 = arith.addf %125, %126 : vector<2x18x18xf32>
    %c0_44 = arith.constant 0 : index
    %c1_45 = arith.constant 1 : index
    %c0_46 = arith.constant 0 : index
    %c0_47 = arith.constant 0 : index
    %128 = vector.load %arg5[%c0_44, %c1_45, %c0_46, %c0_47] : memref<2x3x18x18xf32, #tpu.memory_space<vmem>>, vector<2x1x18x18xf32>
    %129 = vector.shape_cast %128 : vector<2x1x18x18xf32> to vector<2x18x18xf32>
    %130 = vector.shape_cast %127 : vector<2x18x18xf32> to vector<2x1x18x18xf32>
    tpu.vector_store %arg5[%c0_44, %c1_45, %c0_46, %c0_47], %130 {strides = array<i32>} : memref<2x3x18x18xf32, #tpu.memory_space<vmem>>, vector<2x1x18x18xf32>,
    %131 = vector.extract_strided_slice %4 {offsets = [0, 0, 0, 0], sizes = [2, 1, 18, 18], strides = [1, 1, 1, 1]} : vector<2x3x18x18xf32> to vector<2x1x18x18xf32>
    %132 = vector.shape_cast %131 : vector<2x1x18x18xf32> to vector<2x18x18xf32>
    %c6 = arith.constant 6 : index
    %133 = memref.load %arg1[%c6] : memref<9xf32, #tpu.memory_space<smem>>
    %134 = vector.broadcast %133 : f32 to vector<2x18x18xf32>
    %135 = arith.mulf %132, %134 : vector<2x18x18xf32>
    %136 = vector.extract_strided_slice %4 {offsets = [0, 1, 0, 0], sizes = [2, 1, 18, 18], strides = [1, 1, 1, 1]} : vector<2x3x18x18xf32> to vector<2x1x18x18xf32>
    %137 = vector.shape_cast %136 : vector<2x1x18x18xf32> to vector<2x18x18xf32>
    %c7 = arith.constant 7 : index
    %138 = memref.load %arg1[%c7] : memref<9xf32, #tpu.memory_space<smem>>
    %139 = vector.broadcast %138 : f32 to vector<2x18x18xf32>
    %140 = arith.mulf %137, %139 : vector<2x18x18xf32>
    %141 = arith.addf %135, %140 : vector<2x18x18xf32>
    %142 = vector.extract_strided_slice %4 {offsets = [0, 2, 0, 0], sizes = [2, 1, 18, 18], strides = [1, 1, 1, 1]} : vector<2x3x18x18xf32> to vector<2x1x18x18xf32>
    %143 = vector.shape_cast %142 : vector<2x1x18x18xf32> to vector<2x18x18xf32>
    %c8 = arith.constant 8 : index
    %144 = memref.load %arg1[%c8] : memref<9xf32, #tpu.memory_space<smem>>
    %145 = vector.broadcast %144 : f32 to vector<2x18x18xf32>
    %146 = arith.mulf %143, %145 : vector<2x18x18xf32>
    %147 = arith.addf %141, %146 : vector<2x18x18xf32>
    %c2_48 = arith.constant 2 : index
    %148 = memref.load %arg2[%c2_48] : memref<3xf32, #tpu.memory_space<smem>>
    %149 = vector.broadcast %148 : f32 to vector<2x18x18xf32>
    %150 = arith.addf %147, %149 : vector<2x18x18xf32>
    %cst_49 = arith.constant 3.000000e+00 : f32
    %151 = vector.broadcast %cst_49 : f32 to vector<2x18x18xf32>
    %152 = arith.addf %150, %151 : vector<2x18x18xf32>
    %cst_50 = arith.constant 0.000000e+00 : f32
    %cst_51 = arith.constant 6.000000e+00 : f32
    %153 = vector.broadcast %cst_50 : f32 to vector<2x18x18xf32>
    %154 = arith.maximumf %153, %152 : vector<2x18x18xf32>
    %155 = vector.broadcast %cst_51 : f32 to vector<2x18x18xf32>
    %156 = arith.minimumf %155, %154 : vector<2x18x18xf32>
    %157 = arith.mulf %150, %156 : vector<2x18x18xf32>
    %158 = vector.shape_cast %157 : vector<2x18x18xf32> to vector<1x2x18x18xf32>
    %cst_52 = arith.constant dense<0.000000e+00> : vector<1xf32>
    %159 = vector.multi_reduction <add>, %158, %cst_52 [1, 2, 3] : vector<1x2x18x18xf32> to vector<1xf32>
    %160 = vector.shape_cast %159 : vector<1xf32> to vector<1x1x1x1xf32>
    %161 = vector.extract %160[0, 0, 0, 0] : f32 from vector<1x1x1x1xf32>
    %162 = vector.broadcast %161 : f32 to vector<1x1x1xf32>
    %163 = arith.mulf %157, %157 : vector<2x18x18xf32>
    %164 = vector.shape_cast %163 : vector<2x18x18xf32> to vector<1x2x18x18xf32>
    %cst_53 = arith.constant dense<0.000000e+00> : vector<1xf32>
    %165 = vector.multi_reduction <add>, %164, %cst_53 [1, 2, 3] : vector<1x2x18x18xf32> to vector<1xf32>
    %166 = vector.shape_cast %165 : vector<1xf32> to vector<1x1x1x1xf32>
    %167 = vector.extract %166[0, 0, 0, 0] : f32 from vector<1x1x1x1xf32>
    %168 = vector.broadcast %167 : f32 to vector<1x1x1xf32>
    %cst_54 = arith.constant 2.57201638E-4 : f32
    %169 = vector.broadcast %cst_54 : f32 to vector<1x1x1xf32>
    %170 = arith.mulf %162, %169 : vector<1x1x1xf32>
    %cst_55 = arith.constant 4.28669409E-5 : f32
    %171 = vector.broadcast %cst_55 : f32 to vector<1x1x1xf32>
    %172 = arith.mulf %168, %171 : vector<1x1x1xf32>
    %173 = arith.mulf %170, %170 : vector<1x1x1xf32>
    %174 = arith.subf %172, %173 : vector<1x1x1xf32>
    %cst_56 = arith.constant 9.99999974E-6 : f32
    %175 = vector.broadcast %cst_56 : f32 to vector<1x1x1xf32>
    %176 = arith.addf %174, %175 : vector<1x1x1xf32>
    %177 = math.rsqrt %176 : vector<1x1x1xf32>
    %c2_57 = arith.constant 2 : index
    %178 = memref.load %arg3[%c2_57] : memref<3xf32, #tpu.memory_space<smem>>
    %179 = vector.broadcast %178 : f32 to vector<1x1x1xf32>
    %180 = arith.mulf %179, %177 : vector<1x1x1xf32>
    %c2_58 = arith.constant 2 : index
    %181 = memref.load %arg4[%c2_58] : memref<3xf32, #tpu.memory_space<smem>>
    %182 = arith.mulf %170, %180 : vector<1x1x1xf32>
    %183 = vector.broadcast %181 : f32 to vector<1x1x1xf32>
    %184 = arith.subf %183, %182 : vector<1x1x1xf32>
    %cst_59 = arith.constant 0.166666672 : f32
    %185 = vector.broadcast %cst_59 : f32 to vector<1x1x1xf32>
    %186 = arith.mulf %180, %185 : vector<1x1x1xf32>
    %187 = vector.broadcast %186 : vector<1x1x1xf32> to vector<2x18x18xf32>
    %188 = arith.mulf %157, %187 : vector<2x18x18xf32>
    %189 = vector.broadcast %184 : vector<1x1x1xf32> to vector<2x18x18xf32>
    %190 = arith.addf %188, %189 : vector<2x18x18xf32>
    %c0_60 = arith.constant 0 : index
    %c2_61 = arith.constant 2 : index
    %c0_62 = arith.constant 0 : index
    %c0_63 = arith.constant 0 : index
    %191 = vector.load %arg5[%c0_60, %c2_61, %c0_62, %c0_63] : memref<2x3x18x18xf32, #tpu.memory_space<vmem>>, vector<2x1x18x18xf32>
    %192 = vector.shape_cast %191 : vector<2x1x18x18xf32> to vector<2x18x18xf32>
    %193 = vector.shape_cast %190 : vector<2x18x18xf32> to vector<2x1x18x18xf32>
    tpu.vector_store %arg5[%c0_60, %c2_61, %c0_62, %c0_63], %193 {strides = array<i32>} : memref<2x3x18x18xf32, #tpu.memory_space<vmem>>, vector<2x1x18x18xf32>,
    return
  }
}

</mosaic_0001>

<bundles_post_ra>
// kernel: model_forward.1
= control target key start
LH: loop header
LB: loop body
LE: loop exit
PB: predicated region body
PF: predicated region fallthrough
CT: control target
= control target key end

     0   :  { %10 = vsyncpa [#allocation4], 0  ;;  %s1300_s0 = inlined_call_operand.hbm [shape: f32[2,3,16,16], index: 0, kind: input, shape index: {}]   ;;  %s1301_s1 = inlined_call_operand.vmem [shape: f32[9], index: 1, kind: input, shape index: {}]   ;;  %s1302_s2 = inlined_call_operand.vmem [shape: f32[3], index: 2, kind: input, shape index: {}]   ;;  %s1303_s3 = inlined_call_operand.vmem [shape: f32[3], index: 3, kind: input, shape index: {}]   ;;  %s1304_s4 = inlined_call_operand.vmem [shape: f32[3], index: 4, kind: input, shape index: {}]   ;;  %s1305_s5 = inlined_call_operand.vmem [shape: f32[2,3,18,18], index: 5, kind: output, shape index: {}]  }
   0x1   :  { %11 = vsyncpa [#allocation5], 0 }
   0x2   :  { %12 = vsyncpa [#allocation8], 0  ;;  %s41_s20 = sshll.u32 %s1302_s2, 4  ;;  %s42_s20 = int_to_ptr.vmem [resolvable:$true] %s41_s20 }
   0x3   :  { %13 = vsyncpa [#allocation11], 0  ;;  %s18_s23 = sshll.u32 %s1300_s0, 4  ;;  %s809_s24 = smov [#allocation7]   ;;  %s19_s23 = int_to_ptr.hbm [resolvable:$true] %s18_s23 }
   0x4   :  { %44 = dma.vmem_to_smem %s42_s20, 16, %s809_s24, [#allocation8]  }
   0x5   :  { %s810_s25 = smov [#allocation3]   ;;  %s811_s27 = smov 128  }
   0x6   :  { %s20_s26 = sshll.u32 %s810_s25, 4  ;;  %s812_s28 = smov 8   ;;  %s21_s26 = int_to_ptr.vmem [resolvable:$true] %s20_s26 }
   0x7   :  { %26 = dma.hbm_to_vmem [thread:$0]  %s19_s23, 1536, %s21_s26, [#allocation4], %s811_s27, %s811_s27, %s812_s28  }
   0x8   :  { %s32_s6 = sshll.u32 %s1301_s1, 4  ;;  %s50_s8 = sshll.u32 %s1303_s3, 4  ;;  %s33_s6 = int_to_ptr.vmem [resolvable:$true] %s32_s6  ;;  %s51_s8 = int_to_ptr.vmem [resolvable:$true] %s50_s8 }
   0x9   :  { %s813_s9 = smov [#allocation6]   ;;  %s814_s0 = smov [#allocation9]  }
   0xa   :  { %35 = dma.vmem_to_smem %s33_s6, 16, %s813_s9, [#allocation5]  }
   0xb   :  { %53 = dma.vmem_to_smem %s51_s8, 16, %s814_s0, [#allocation8]  }
   0xc   :  { %s59_s12 = sshll.u32 %s1304_s4, 4  ;;  %s815_s13 = smov [#allocation10]   ;;  %s60_s12 = int_to_ptr.vmem [resolvable:$true] %s59_s12 }
   0xd   :  { %62 = dma.vmem_to_smem %s60_s12, 16, %s815_s13, [#allocation11]  }
   0xe   :  { %801 = dma.done.wait [#allocation4], 1536  }
   0xf   :  { %802 = vsyncadd [#allocation4], 4294965760 }
  0x10   :  { %803 = dma.done.wait [#allocation5], 16  }
  0x11   :  { %804 = vsyncadd [#allocation5], 4294967280 }
  0x12   :  { %805 = dma.done.wait [#allocation8], 32  }
  0x13   :  { %806 = vsyncadd [#allocation8], 4294967264 }
  0x14   :  { %807 = dma.done.wait [#allocation11], 16  }
  0x15   :  { %808 = vsyncadd [#allocation11], 4294967280 }
  0x16   :  { %83 = sfence }
  0x17   :  { %v106_v0 = vld [vmem:[#allocation3 + $0x10] sm:$0xff]  ;;  %v104_v1 = vld [vmem:[#allocation3] sm:$0xff]  ;;  %s816_s1 = smov 1   ;;  %v107_v3 = vld [vmem:[#allocation3 + $0x18] sm:$0xff]  ;;  %vm84_vm0 = vcmask 146432   ;;  %v817_v12 = vmov 0.0  }
  0x18   :  { %132 = vrot.lane.b32.xlu1 %v106_v0, %s816_s1  ;;  %128 = vrot.lane.b32.xlu0 %v104_v1, %s816_s1  ;;  %v108_v2 = vld [vmem:[#allocation3 + $0x20] sm:$0xff]  ;;  %v105_v4 = vld [vmem:[#allocation3 + $0x8] sm:$0xff]  ;;  %v110_v7 = vld [vmem:[#allocation3 + $0x30] sm:$0xff]  ;;  %92 = vst.msk [vmem:[#allocation2 + $0x30] sm:$0xff] %vm84_vm0, %v817_v12  ;;  %vm87_vm1 = vcmask 140288   ;;  %vm164_vm2 = vcmask 138248  }
  0x19   :  { %136 = vrot.lane.b32.xlu2 %v108_v2, %s816_s1  ;;  %v109_v5 = vld [vmem:[#allocation3 + $0x28] sm:$0xff]  ;;  %v112_v6 = vld [vmem:[#allocation3 + $0x40] sm:$0xff]  ;;  %v111_v8 = vld [vmem:[#allocation3 + $0x38] sm:$0xff]  ;;  %93 = vst.msk [vmem:[#allocation2 + $0x38] sm:$0xff] %vm84_vm0, %v817_v12  ;;  %s678_s3 = sld [smem:[#allocation6 + $0x3]] }
  0x1a   :  { %v114_v9 = vld [vmem:[#allocation3 + $0x50] sm:$0xff]  ;;  %v113_v10 = vld [vmem:[#allocation3 + $0x48] sm:$0xff]  ;;  %v115_v11 = vld [vmem:[#allocation3 + $0x58] sm:$0xff]  ;;  %85 = vst.msk [vmem:[#allocation2] sm:$0xff] %vm84_vm0, %v817_v12  ;;  %s679_s4 = sld [smem:[#allocation6 + $0x4]] }
  0x1b   :  { %86 = vst.msk [vmem:[#allocation2 + $0x8] sm:$0xff] %vm84_vm0, %v817_v12  ;;  %s680_s14 = sld [smem:[#allocation6 + $0x5]] }
  0x1c   :  { %89 = vst.msk [vmem:[#allocation2 + $0x18] sm:$0xff] %vm84_vm0, %v817_v12  ;;  %s195_s15 = sld [smem:[#allocation6]] }
  0x1d   :  { %90 = vst.msk [vmem:[#allocation2 + $0x20] sm:$0xff] %vm84_vm0, %v817_v12  ;;  %s676_s16 = sld [smem:[#allocation6 + $0x1]] }
  0x1e   :  { %95 = vst.msk [vmem:[#allocation2 + $0x48] sm:$0xff] %vm84_vm0, %v817_v12  ;;  %s677_s17 = sld [smem:[#allocation6 + $0x2]] }
  0x1f   :  { %96 = vst.msk [vmem:[#allocation2 + $0x50] sm:$0xff] %vm84_vm0, %v817_v12  ;;  %s691_s18 = sld [smem:[#allocation6 + $0x7]]  ;;  %v895_v22 = vstv %s678_s3 }
  0x20   :  { %134 = vrot.lane.b32.xlu1 %v107_v3, %s816_s1  ;;  %130 = vrot.lane.b32.xlu0 %v105_v4, %s816_s1  ;;  %98 = vst.msk [vmem:[#allocation2 + $0x60] sm:$0xff] %vm84_vm0, %v817_v12  ;;  %s690_s19 = sld [smem:[#allocation6 + $0x6]]  ;;  %v891_v19 = vstv %s679_s4 }
  0x21   :  { %138 = vrot.lane.b32.xlu2 %v109_v5, %s816_s1  ;;  %99 = vst.msk [vmem:[#allocation2 + $0x68] sm:$0xff] %vm84_vm0, %v817_v12  ;;  %s681_s20 = sld [smem:[#allocation7 + $0x1]]  ;;  %v897_v23 = vstv %s680_s14 }
  0x22   :  { %101 = vst.msk [vmem:[#allocation2 + $0x78] sm:$0xff] %vm84_vm0, %v817_v12  ;;  %s887_s21 = sld [smem:[#allocation6 + $0x8]]  ;;  %v899_v24 = vstv %s195_s15 }
  0x23   :  { %102 = vst.msk [vmem:[#allocation2 + $0x80] sm:$0xff] %vm84_vm0, %v817_v12  ;;  %s889_s22 = sld [smem:[#allocation7]]  ;;  %v893_v20 = vstv %s676_s16 }
  0x24   :  { %94 = vst.msk [vmem:[#allocation2 + $0x40] sm:$0x3] %vm87_vm1, %v817_v12  ;;  %v901_v25 = vstv %s677_s17  ;;  %s1114_s23 = sld [smem:[#allocation7 + $0x2]] }
  0x25   :  { %88 = vst.msk [vmem:[#allocation2 + $0x10] sm:$0x3] %vm87_vm1, %v817_v12  ;;  %v903_v29 = vstv %s691_s18  ;;  %s326_s28 = sld [smem:[#allocation9]] }
  0x26   :  { %91 = vst.msk [vmem:[#allocation2 + $0x28] sm:$0x3] %vm87_vm1, %v817_v12  ;;  %v908_v33 = vstv %s690_s19  ;;  %s329_s29 = sld [smem:[#allocation10]] }
  0x27   :  { %97 = vst.msk [vmem:[#allocation2 + $0x58] sm:$0x3] %vm87_vm1, %v817_v12  ;;  %v917_v41 = vstv %s681_s20  ;;  %s1197_s30 = sld [smem:[#allocation9 + $0x1]] }
  0x28   :  { %144 = vrot.lane.b32.xlu1 %v112_v6, %s816_s1  ;;  %140 = vrot.lane.b32.xlu0 %v110_v7, %s816_s1  ;;  %100 = vst.msk [vmem:[#allocation2 + $0x70] sm:$0x3] %vm87_vm1, %v817_v12  ;;  %v924_v47 = vstv %s887_s21  ;;  %s1201_s2 = sld [smem:[#allocation10 + $0x1]] }
  0x29   :  { %142 = vrot.lane.b32.xlu2 %v111_v8, %s816_s1  ;;  %103 = vst.msk [vmem:[#allocation2 + $0x88] sm:$0x3] %vm87_vm1, %v817_v12  ;;  %v931_v51 = vstv %s889_s22 }
  0x30   :  { %148 = vrot.lane.b32.xlu1 %v114_v9, %s816_s1  ;;  %146 = vrot.lane.b32.xlu0 %v113_v10, %s816_s1 }
  0x31   :  { %150 = vrot.lane.b32.xlu2 %v115_v11, %s816_s1 }
  0x73   :  { %v137_v13 = vpop.permute.xlu2 %136 }
  0x74   :  { %169 = vst.msk [vmem:[#allocation2 + $0x31] sm:$0xff] %vm164_vm2, %v137_v13 }
  0x7b   :  { %v139_v14 = vpop.permute.xlu2 %138  ;;  %v183_v21 = vld [vmem:[#allocation2 + $0x30] sm:$0xff] }
  0x7c   :  { %170 = vst.msk [vmem:[#allocation2 + $0x39] sm:$0xff] %vm164_vm2, %v139_v14  ;;  %v376_v37 = vmul.f32 %v897_v23, %v183_v21  ;;  %v219_v39 = vmul.f32 %v901_v25, %v183_v21  ;;  %v950_v59 = vmul.f32 %v924_v47, %v183_v21 }
  0x83   :  { %v143_v15 = vpop.permute.xlu2 %142  ;;  %v184_v34 = vld [vmem:[#allocation2 + $0x38] sm:$0xff]  ;;  %v911_v35 = vld [vmem:[#allocation2 + $0x40] sm:$0x3] }
  0x84   :  { %172 = vst.msk [vmem:[#allocation2 + $0x51] sm:$0xff] %vm164_vm2, %v143_v15  ;;  %v377_v48 = vmul.f32 %v897_v23, %v184_v34  ;;  %v378_v49 = vmul.f32 %v897_v23, %v911_v35  ;;  %v220_v50 = vmul.f32 %v901_v25, %v184_v34  ;;  %v221_v54 = vmul.f32 %v901_v25, %v911_v35 }
  0x85   :  { %v957_v3 = vmul.f32 %v924_v47, %v184_v34 }
  0x8a   :  { %v133_v16 = vpop.permute.xlu1 %132  ;;  %v129_v17 = vpop.permute.xlu0 %128 }
  0x8b   :  { %167 = vst.msk [vmem:[#allocation2 + $0x19] sm:$0xff] %vm164_vm2, %v133_v16  ;;  %v151_v18 = vpop.permute.xlu2 %150  ;;  %v188_v40 = vld [vmem:[#allocation2 + $0x58] sm:$0x3] }
  0x8c   :  { %165 = vst.msk [vmem:[#allocation2 + $0x1] sm:$0xff] %vm164_vm2, %v129_v17  ;;  %v934_v52 = vmul.f32 %v895_v22, %v188_v40  ;;  %v943_v57 = vmul.f32 %v899_v24, %v188_v40 }
  0x8d   :  { %176 = vst.msk [vmem:[#allocation2 + $0x81] sm:$0xff] %vm164_vm2, %v151_v18 }
  0x92   :  { %v135_v26 = vpop.permute.xlu1 %134  ;;  %v131_v27 = vpop.permute.xlu0 %130  ;;  %v180_v28 = vld [vmem:[#allocation2 + $0x18] sm:$0xff] }
  0x93   :  { %168 = vst.msk [vmem:[#allocation2 + $0x21] sm:$0xff] %vm164_vm2, %v135_v26  ;;  %v177_v30 = vld [vmem:[#allocation2] sm:$0xff]  ;;  %v362_v31 = vmul.f32 %v891_v19, %v180_v28  ;;  %v205_v32 = vmul.f32 %v893_v20, %v180_v28  ;;  %v520_v42 = vmul.f32 %v903_v29, %v180_v28 }
  0x94   :  { %166 = vst.msk [vmem:[#allocation2 + $0x9] sm:$0xff] %vm164_vm2, %v131_v27  ;;  %v354_v36 = vmul.f32 %v895_v22, %v177_v30  ;;  %v197_v38 = vmul.f32 %v899_v24, %v177_v30  ;;  %v920_v43 = vld [vmem:[#allocation2 + $0x88] sm:$0x3]  ;;  %v512_v46 = vmul.f32 %v908_v33, %v177_v30 }
  0x95   :  { %v940_v56 = vmul.f32 %v897_v23, %v920_v43  ;;  %v947_v58 = vmul.f32 %v901_v25, %v920_v43 }
  0x96   :  { %v368_v44 = vadd.f32 %v362_v31, %v354_v36  ;;  %v211_v45 = vadd.f32 %v205_v32, %v197_v38  ;;  %v954_v2 = vadd.f32 %v520_v42, %v512_v46 }
  0x98   :  { %v382_v53 = vadd.f32 %v376_v37, %v368_v44  ;;  %v225_v55 = vadd.f32 %v219_v39, %v211_v45  ;;  %v974_v44 = vmul.f32 %v908_v33, %v188_v40 }
  0x9a   :  { %v145_v60 = vpop.permute.xlu1 %144  ;;  %v141_v61 = vpop.permute.xlu0 %140  ;;  %v181_v62 = vld [vmem:[#allocation2 + $0x20] sm:$0xff]  ;;  %v182_v63 = vld [vmem:[#allocation2 + $0x28] sm:$0x3]  ;;  %v390_v0 = vadd.f32 %v917_v41, %v382_v53  ;;  %v233_v1 = vadd.f32 %v931_v51, %v225_v55 }
  0x9b   :  { %173 = vst.msk [vmem:[#allocation2 + $0x61] sm:$0xff] %vm164_vm2, %v145_v60  ;;  %v178_v4 = vld [vmem:[#allocation2 + $0x8] sm:$0xff]  ;;  %v179_v5 = vld [vmem:[#allocation2 + $0x10] sm:$0x3]  ;;  %v363_v6 = vmul.f32 %v891_v19, %v181_v62  ;;  %v364_v7 = vmul.f32 %v891_v19, %v182_v63  ;;  %v206_v8 = vmul.f32 %v893_v20, %v181_v62  ;;  %v207_v9 = vmul.f32 %v893_v20, %v182_v63 }
  0x9c   :  { %171 = vst.msk [vmem:[#allocation2 + $0x49] sm:$0xff] %vm164_vm2, %v141_v61  ;;  %v355_v10 = vmul.f32 %v895_v22, %v178_v4  ;;  %v356_v11 = vmul.f32 %v895_v22, %v179_v5  ;;  %v396_v12 = vadd.f32 3.0, %v390_v0  ;;  %v198_v13 = vmul.f32 %v899_v24, %v178_v4 }
  0x9d   :  { %v199_v14 = vmul.f32 %v899_v24, %v179_v5  ;;  %v239_v15 = vadd.f32 3.0, %v233_v1  ;;  %v513_v16 = vmul.f32 %v908_v33, %v178_v4  ;;  %v514_v17 = vmul.f32 %v908_v33, %v179_v5 }
  0x9e   :  { %v369_v18 = vadd.f32 %v363_v6, %v355_v10  ;;  %v370_v21 = vadd.f32 %v364_v7, %v356_v11  ;;  %v402_v26 = vmax.f32 %v396_v12, 0.0  ;;  %v212_v27 = vadd.f32 %v206_v8, %v198_v13 }
  0x9f   :  { %v213_v28 = vadd.f32 %v207_v9, %v199_v14  ;;  %v245_v30 = vmax.f32 %v239_v15, 0.0  ;;  %v521_v31 = vmul.f32 %v903_v29, %v181_v62  ;;  %v522_v32 = vmul.f32 %v903_v29, %v182_v63 }
  0xa0   :  { %v383_v34 = vadd.f32 %v377_v48, %v369_v18  ;;  %v384_v36 = vadd.f32 %v378_v49, %v370_v21  ;;  %v408_v37 = vmin.f32 %v402_v26, 6.0  ;;  %v226_v38 = vadd.f32 %v220_v50, %v212_v27 }
  0xa1   :  { %v227_v39 = vadd.f32 %v221_v54, %v213_v28  ;;  %v251_v42 = vmin.f32 %v245_v30, 6.0  ;;  %v976_v45 = vadd.f32 %v521_v31, %v513_v16  ;;  %v995_v7 = vadd.f32 %v522_v32, %v514_v17 }
  0xa2   :  { %v149_v46 = vpop.permute.xlu1 %148  ;;  %v147_v53 = vpop.permute.xlu0 %146  ;;  %v978_v55 = vld [vmem:[#allocation2 + $0x60] sm:$0xff]  ;;  %v391_v60 = vadd.f32 %v917_v41, %v383_v34  ;;  %v392_v61 = vadd.f32 %v917_v41, %v384_v36  ;;  %v982_v62 = vmul.f32 %v408_v37, %v390_v0  ;;  %v234_v48 = vadd.f32 %v931_v51, %v226_v38 }
  0xa3   :  { %175 = vst.msk [vmem:[#allocation2 + $0x79] sm:$0xff] %vm164_vm2, %v149_v46  ;;  %v186_v49 = vld [vmem:[#allocation2 + $0x48] sm:$0xff]  ;;  %v187_v50 = vld [vmem:[#allocation2 + $0x50] sm:$0xff]  ;;  %v365_v40 = vmul.f32 %v891_v19, %v978_v55  ;;  %v208_v54 = vmul.f32 %v893_v20, %v978_v55  ;;  %v235_v63 = vadd.f32 %v931_v51, %v227_v39  ;;  %v991_v4 = vmul.f32 %v251_v42, %v233_v1 }
  0xa4   :  { %174 = vst.msk [vmem:[#allocation2 + $0x69] sm:$0xff] %vm164_vm2, %v147_v53  ;;  %v357_v0 = vmul.f32 %v895_v22, %v186_v49  ;;  %v397_v5 = vadd.f32 3.0, %v391_v60  ;;  %v398_v6 = vadd.f32 3.0, %v392_v61  ;;  %v358_v8 = vmul.f32 %v895_v22, %v187_v50 }
  0xa5   :  { %v420_v9 = vsel %vm84_vm0, %v982_v62, 0.0  ;;  %v200_v10 = vmul.f32 %v899_v24, %v186_v49  ;;  %v240_v11 = vadd.f32 3.0, %v234_v48  ;;  %v201_v1 = vmul.f32 %v899_v24, %v187_v50 }
  0xa6   :  { %v403_v12 = vmax.f32 %v397_v5, 0.0  ;;  %v404_v13 = vmax.f32 %v398_v6, 0.0  ;;  %v241_v14 = vadd.f32 3.0, %v235_v63  ;;  %v371_v15 = vadd.f32 %v365_v40, %v357_v0 }
  0xa7   :  { %v214_v16 = vadd.f32 %v208_v54, %v200_v10  ;;  %v246_v18 = vmax.f32 %v240_v11, 0.0  ;;  %v284_v17 = vmul.f32 %v991_v4, %v991_v4  ;;  %v263_v27 = vsel %vm84_vm0, %v991_v4, 0.0 }
  0xa8   :  { %v409_v21 = vmin.f32 %v403_v12, 6.0  ;;  %v410_v26 = vmin.f32 %v404_v13, 6.0  ;;  %v247_v22 = vmax.f32 %v241_v14, 0.0  ;;  %v1011_v24 = vmul.f32 %v982_v62, %v982_v62 }
  0xa9   :  { %v252_v28 = vmin.f32 %v246_v18, 6.0  ;;  %v1007_v30 = vsel %vm84_vm0, %v284_v17, 0.0  ;;  %v1014_v31 = vmul.f32 %v908_v33, %v186_v49  ;;  %v1025_v39 = vmul.f32 %v908_v33, %v187_v50 }
  0xaa   :  { %v1016_v32 = vld [vmem:[#allocation2 + $0x78] sm:$0xff]  ;;  %v1018_v34 = vld [vmem:[#allocation2 + $0x80] sm:$0xff]  ;;  %v1020_v36 = vmul.f32 %v409_v21, %v391_v60  ;;  %v1022_v37 = vmul.f32 %v410_v26, %v392_v61  ;;  %v253_v38 = vmin.f32 %v247_v22, 6.0 }
  0xab   :  { %v1027_v42 = vld [vmem:[#allocation2 + $0x68] sm:$0xff]  ;;  %v1029_v46 = vld [vmem:[#allocation2 + $0x70] sm:$0x3]  ;;  %v379_v53 = vmul.f32 %v897_v23, %v1016_v32  ;;  %v380_v49 = vmul.f32 %v897_v23, %v1018_v34  ;;  %v222_v60 = vmul.f32 %v901_v25, %v1016_v32  ;;  %v223_v61 = vmul.f32 %v901_v25, %v1018_v34 }
  0xac   :  { %v366_v33 = vmul.f32 %v891_v19, %v1027_v42  ;;  %v367_v50 = vmul.f32 %v891_v19, %v1029_v46  ;;  %v421_v40 = vsel %vm84_vm0, %v1020_v36, 0.0  ;;  %v423_v54 = vsel %vm87_vm1, %v1022_v37, 0.0 }
  0xad   :  { %v385_v0 = vadd.f32 %v379_v53, %v371_v15  ;;  %v422_v23 = vadd.f32 %v421_v40, %v420_v9  ;;  %v209_v5 = vmul.f32 %v893_v20, %v1027_v42  ;;  %v210_v25 = vmul.f32 %v893_v20, %v1029_v46 }
  0xae   :  { %v372_v6 = vadd.f32 %v366_v33, %v358_v8  ;;  %v373_v10 = vadd.f32 %v367_v50, %v934_v52  ;;  %v228_v11 = vadd.f32 %v222_v60, %v214_v16  ;;  %v1052_v12 = vmul.f32 %v252_v28, %v234_v48 }
  0xaf   :  { %v393_v19 = vadd.f32 %v917_v41, %v385_v0  ;;  %v424_v13 = vadd.f32 %v423_v54, %v422_v23  ;;  %v215_v14 = vadd.f32 %v209_v5, %v201_v1  ;;  %v216_v18 = vadd.f32 %v210_v25, %v943_v57 }
  0xb0   :  { %v386_v15 = vadd.f32 %v380_v49, %v372_v6  ;;  %v387_v9 = vadd.f32 %v940_v56, %v373_v10  ;;  %v236_v17 = vadd.f32 %v931_v51, %v228_v11  ;;  %v1058_v21 = vmul.f32 %v253_v38, %v235_v63 }
  0xb1   :  { %v399_v20 = vadd.f32 3.0, %v393_v19  ;;  %v229_v8 = vadd.f32 %v223_v61, %v215_v14  ;;  %v230_v52 = vadd.f32 %v947_v58, %v216_v18  ;;  %v264_v48 = vsel %vm84_vm0, %v1052_v12, 0.0 }
  0xb2   :  { %v394_v16 = vadd.f32 %v917_v41, %v386_v15  ;;  %v395_v1 = vadd.f32 %v917_v41, %v387_v9  ;;  %v242_v26 = vadd.f32 3.0, %v236_v17  ;;  %v265_v57 = vadd.f32 %v264_v48, %v263_v27 }
  0xb3   :  { %v405_v22 = vmax.f32 %v399_v20, 0.0  ;;  %v237_v56 = vadd.f32 %v931_v51, %v229_v8  ;;  %v238_v28 = vadd.f32 %v931_v51, %v230_v52  ;;  %v266_v63 = vsel %vm87_vm1, %v1058_v21, 0.0 }
  0xb4   :  { %v400_v38 = vadd.f32 3.0, %v394_v16  ;;  %v401_v53 = vadd.f32 3.0, %v395_v1  ;;  %v248_v58 = vmax.f32 %v242_v26, 0.0  ;;  %v267_v49 = vadd.f32 %v266_v63, %v265_v57 }
  0xb5   :  { %v411_v60 = vmin.f32 %v405_v22, 6.0  ;;  %v243_v61 = vadd.f32 3.0, %v237_v56  ;;  %v244_v33 = vadd.f32 3.0, %v238_v28  ;;  %v285_v41 = vmul.f32 %v1052_v12, %v1052_v12 }
  0xb6   :  { %v406_v50 = vmax.f32 %v400_v38, 0.0  ;;  %v407_v27 = vmax.f32 %v401_v53, 0.0  ;;  %v254_v40 = vmin.f32 %v248_v58, 6.0  ;;  %v286_v54 = vmul.f32 %v1058_v21, %v1058_v21 }
  0xb7   :  { %v1073_v51 = vmul.f32 %v411_v60, %v393_v19  ;;  %v249_v0 = vmax.f32 %v243_v61, 0.0  ;;  %v250_v23 = vmax.f32 %v244_v33, 0.0  ;;  %v291_v5 = vsel %vm84_vm0, %v285_v41, 0.0 }
  0xb8   :  { %v412_v25 = vmin.f32 %v406_v50, 6.0  ;;  %v413_v6 = vmin.f32 %v407_v27, 6.0  ;;  %v1076_v10 = vmul.f32 %v254_v40, %v236_v17  ;;  %v292_v11 = vadd.f32 %v291_v5, %v1007_v30 }
  0xb9   :  { %v425_v14 = vsel %vm84_vm0, %v1073_v51, 0.0  ;;  %v255_v18 = vmin.f32 %v249_v0, 6.0  ;;  %v256_v15 = vmin.f32 %v250_v23, 6.0  ;;  %v293_v9 = vsel %vm87_vm1, %v286_v54, 0.0 }
  0xba   :  { %v1082_v20 = vmul.f32 %v412_v25, %v394_v16  ;;  %v1084_v19 = vmul.f32 %v413_v6, %v395_v1  ;;  %v426_v8 = vadd.f32 %v425_v14, %v424_v13  ;;  %v268_v52 = vsel %vm84_vm0, %v1076_v10, 0.0 }
  0xbb   :  { %v1088_v48 = vmul.f32 %v255_v18, %v237_v56  ;;  %v1090_v17 = vmul.f32 %v256_v15, %v238_v28  ;;  %v269_v30 = vadd.f32 %v268_v52, %v267_v49  ;;  %v287_v26 = vmul.f32 %v1076_v10, %v1076_v10 }
  0xbc   :  { %v427_v57 = vsel %vm84_vm0, %v1082_v20, 0.0  ;;  %v429_v16 = vsel %vm87_vm1, %v1084_v19, 0.0  ;;  %v294_v1 = vadd.f32 %v293_v9, %v292_v11  ;;  %v442_v13 = vmul.f32 %v1020_v36, %v1020_v36 }
  0xbd   :  { %v428_v22 = vadd.f32 %v427_v57, %v426_v8  ;;  %v270_v56 = vsel %vm84_vm0, %v1088_v48, 0.0  ;;  %v272_v28 = vsel %vm87_vm1, %v1090_v17, 0.0  ;;  %v288_v63 = vmul.f32 %v1088_v48, %v1088_v48 }
  0xbe   :  { %v271_v38 = vadd.f32 %v270_v56, %v269_v30  ;;  %v289_v53 = vmul.f32 %v1090_v17, %v1090_v17  ;;  %v295_v58 = vsel %vm84_vm0, %v287_v26, 0.0  ;;  %v443_v49 = vmul.f32 %v1022_v37, %v1022_v37 }
  0xbf   :  { %v430_v60 = vadd.f32 %v429_v16, %v428_v22  ;;  %v296_v61 = vadd.f32 %v295_v58, %v294_v1  ;;  %v297_v33 = vsel %vm84_vm0, %v288_v63, 0.0  ;;  %v444_v41 = vmul.f32 %v1073_v51, %v1073_v51 }
  0xc0   :  { %v273_v50 = vadd.f32 %v272_v28, %v271_v38  ;;  %v299_v27 = vsel %vm87_vm1, %v289_v53, 0.0  ;;  %v445_v40 = vmul.f32 %v1082_v20, %v1082_v20  ;;  %v447_v54 = vsel %vm84_vm0, %v1011_v24, 0.0 }
  0xc1   :  { %431 = vadd.xlane.f32.xlu2 %v430_v60  ;;  %v298_v0 = vadd.f32 %v297_v33, %v296_v61  ;;  %v446_v23 = vmul.f32 %v1084_v19, %v1084_v19  ;;  %v448_v5 = vsel %vm84_vm0, %v442_v13, 0.0  ;;  %v450_v25 = vsel %vm87_vm1, %v443_v49, 0.0 }
  0xc2   :  { %274 = vadd.xlane.f32.xlu0 %v273_v50  ;;  %v449_v6 = vadd.f32 %v448_v5, %v447_v54  ;;  %v452_v11 = vsel %vm84_vm0, %v444_v41, 0.0  ;;  %v454_v14 = vsel %vm84_vm0, %v445_v40, 0.0  ;;  %v523_v18 = vmul.f32 %v903_v29, %v978_v55 }
  0xc3   :  { %v300_v15 = vadd.f32 %v299_v27, %v298_v0  ;;  %v524_v24 = vmul.f32 %v903_v29, %v1027_v42  ;;  %v525_v9 = vmul.f32 %v903_v29, %v1029_v46  ;;  %v536_v8 = vmul.f32 %v924_v47, %v911_v35 }
  0xc4   :  { %v451_v52 = vadd.f32 %v450_v25, %v449_v6  ;;  %v529_v30 = vadd.f32 %v523_v18, %v1014_v31  ;;  %v537_v26 = vmul.f32 %v924_v47, %v1016_v32  ;;  %v538_v55 = vmul.f32 %v924_v47, %v1018_v34 }
  0xc5   :  { %301 = vadd.xlane.f32.xlu1 %v300_v15  ;;  %v530_v57 = vadd.f32 %v524_v24, %v1025_v39  ;;  %v531_v42 = vadd.f32 %v525_v9, %v974_v44  ;;  %v539_v29 = vmul.f32 %v924_v47, %v920_v43  ;;  %v540_v35 = vadd.f32 %v950_v59, %v954_v2 }
  0xc6   :  { %v453_v46 = vadd.f32 %v452_v11, %v451_v52  ;;  %v541_v31 = vadd.f32 %v957_v3, %v976_v45  ;;  %v542_v32 = vadd.f32 %v536_v8, %v995_v7  ;;  %v543_v16 = vadd.f32 %v537_v26, %v529_v30 }
  0xc7   :  { %v544_v1 = vadd.f32 %v538_v55, %v530_v57  ;;  %v545_v34 = vadd.f32 %v539_v29, %v531_v42  ;;  %v547_v13 = vstv %s1114_s23  ;;  %v456_v28 = vsel %vm87_vm1, %v446_v23, 0.0 }
  0xc8   :  { %v455_v22 = vadd.f32 %v454_v14, %v453_v46  ;;  %v548_v39 = vadd.f32 %v547_v13, %v540_v35  ;;  %v549_v56 = vadd.f32 %v547_v13, %v541_v31  ;;  %v550_v44 = vadd.f32 %v547_v13, %v542_v32 }
  0xc9   :  { %v551_v43 = vadd.f32 %v547_v13, %v543_v16  ;;  %v552_v47 = vadd.f32 %v547_v13, %v544_v1  ;;  %v553_v63 = vadd.f32 %v547_v13, %v545_v34 }
  0xca   :  { %v457_v59 = vadd.f32 %v456_v28, %v455_v22  ;;  %v554_v2 = vadd.f32 3.0, %v548_v39  ;;  %v555_v38 = vadd.f32 3.0, %v549_v56  ;;  %v556_v53 = vadd.f32 3.0, %v550_v44 }
  0xcb   :  { %v557_v3 = vadd.f32 3.0, %v551_v43  ;;  %v558_v45 = vadd.f32 3.0, %v552_v47  ;;  %v559_v7 = vadd.f32 3.0, %v553_v63 }
  0xcc   :  { %458 = vadd.xlane.f32.xlu2 %v457_v59  ;;  %v560_v58 = vmax.f32 %v554_v2, 0.0  ;;  %v561_v49 = vmax.f32 %v555_v38, 0.0  ;;  %v562_v60 = vmax.f32 %v556_v53, 0.0 }
  0xcd   :  { %v563_v61 = vmax.f32 %v557_v3, 0.0  ;;  %v564_v33 = vmax.f32 %v558_v45, 0.0  ;;  %v565_v41 = vmax.f32 %v559_v7, 0.0 }
  0xce   :  { %v566_v50 = vmin.f32 %v560_v58, 6.0  ;;  %v567_v27 = vmin.f32 %v561_v49, 6.0  ;;  %v568_v40 = vmin.f32 %v562_v60, 6.0 }
  0xcf   :  { %v569_v54 = vmin.f32 %v563_v61, 6.0  ;;  %v570_v0 = vmin.f32 %v564_v33, 6.0  ;;  %v571_v6 = vmin.f32 %v565_v41, 6.0 }
  0xd0   :  { %v1151_v23 = vmul.f32 %v566_v50, %v548_v39  ;;  %v1153_v5 = vmul.f32 %v567_v27, %v549_v56  ;;  %v1155_v25 = vmul.f32 %v568_v40, %v550_v44 }
  0xd1   :  { %v1157_v11 = vmul.f32 %v569_v54, %v551_v43  ;;  %v1159_v14 = vmul.f32 %v570_v0, %v552_v47  ;;  %v1177_v57 = vmul.f32 %v571_v6, %v553_v63 }
  0xd2   :  { %v578_v18 = vsel %vm84_vm0, %v1151_v23, 0.0  ;;  %v579_v15 = vsel %vm84_vm0, %v1153_v5, 0.0  ;;  %v599_v24 = vmul.f32 %v1151_v23, %v1151_v23  ;;  %v581_v8 = vsel %vm87_vm1, %v1155_v25, 0.0 }
  0xd3   :  { %v580_v9 = vadd.f32 %v579_v15, %v578_v18  ;;  %v583_v52 = vsel %vm84_vm0, %v1157_v11, 0.0  ;;  %v600_v30 = vmul.f32 %v1153_v5, %v1153_v5  ;;  %v601_v26 = vmul.f32 %v1155_v25, %v1155_v25 }
  0xd4   :  { %v602_v55 = vmul.f32 %v1157_v11, %v1157_v11  ;;  %v585_v29 = vsel %vm84_vm0, %v1159_v14, 0.0  ;;  %v603_v35 = vmul.f32 %v1159_v14, %v1159_v14  ;;  %v605_v46 = vsel %vm84_vm0, %v599_v24, 0.0 }
  0xd5   :  { %v582_v42 = vadd.f32 %v581_v8, %v580_v9  ;;  %v606_v31 = vsel %vm84_vm0, %v600_v30, 0.0  ;;  %v608_v1 = vsel %vm87_vm1, %v601_v26, 0.0  ;;  %v587_v39 = vsel %vm87_vm1, %v1177_v57, 0.0 }
  0xd6   :  { %v607_v16 = vadd.f32 %v606_v31, %v605_v46  ;;  %v610_v34 = vsel %vm84_vm0, %v602_v55, 0.0  ;;  %v604_v56 = vmul.f32 %v1177_v57, %v1177_v57  ;;  %v612_v44 = vsel %vm84_vm0, %v603_v35, 0.0 }
  0xd7   :  { %v584_v32 = vadd.f32 %v583_v52, %v582_v42 }
  0xd8   :  { %v609_v22 = vadd.f32 %v608_v1, %v607_v16  ;;  %v614_v63 = vsel %vm87_vm1, %v604_v56, 0.0 }
  0xd9   :  { %v586_v13 = vadd.f32 %v585_v29, %v584_v32 }
  0xda   :  { %v611_v43 = vadd.f32 %v610_v34, %v609_v22 }
  0xdb   :  { %v588_v28 = vadd.f32 %v587_v39, %v586_v13 }
  0xdc   :  { %v613_v47 = vadd.f32 %v612_v44, %v611_v43 }
  0xdd   :  { %589 = vadd.xlane.f32.xlu0 %v588_v28 }
  0xde   :  { %v615_v59 = vadd.f32 %v614_v63, %v613_v47 }
  0xe0   :  { %616 = vadd.xlane.f32.xlu1 %v615_v59 }
 0x134   :  { %v432_v2 = vpop.xlane.xlu2 %431 }
 0x135   :  { %v433_v38 = vrot.slane %v432_v2, 4  ;;  %v275_v53 = vpop.xlane.xlu0 %274 }
 0x136   :  { %v276_v3 = vrot.slane %v275_v53, 4 }
 0x137   :  { %v434_v45 = vadd.f32 %v433_v38, %v432_v2 }
 0x138   :  { %v277_v7 = vadd.f32 %v276_v3, %v275_v53  ;;  %v302_v58 = vpop.xlane.xlu1 %301 }
 0x139   :  { %v435_v49 = vrot.slane %v434_v45, 2  ;;  %v303_v60 = vrot.slane %v302_v58, 4 }
 0x13a   :  { %v278_v61 = vrot.slane %v277_v7, 2 }
 0x13b   :  { %v304_v33 = vadd.f32 %v303_v60, %v302_v58  ;;  %v436_v50 = vadd.f32 %v435_v49, %v434_v45 }
 0x13c   :  { %v279_v41 = vadd.f32 %v278_v61, %v277_v7 }
 0x13d   :  { %v305_v27 = vrot.slane %v304_v33, 2  ;;  %v437_v15 = vrot.slane %v436_v50, 1 }
 0x13e   :  { %v280_v40 = vrot.slane %v279_v41, 1 }
 0x13f   :  { %v459_v54 = vpop.xlane.xlu2 %458  ;;  %v306_v0 = vadd.f32 %v305_v27, %v304_v33  ;;  %v438_v30 = vadd.f32 %v437_v15, %v436_v50 }
 0x140   :  { %v460_v6 = vrot.slane %v459_v54, 4  ;;  %v281_v18 = vadd.f32 %v280_v40, %v279_v41 }
 0x141   :  { %v307_v24 = vrot.slane %v306_v0, 1 }
 0x142   :  { %v461_v9 = vadd.f32 %v460_v6, %v459_v54  ;;  %702 = vpush %v281_v18  ;;  %v327_v6 = vstv %s326_s28 }
 0x143   :  { %v308_v8 = vadd.f32 %v307_v24, %v306_v0 }
 0x144   :  { %v462_v52 = vrot.slane %v461_v9, 2 }
 0x145   :  { %704 = vpush %v308_v8 }
 0x146   :  { %v463_v26 = vadd.f32 %v462_v52, %v461_v9  ;;  %706 = vpush %v438_v30  ;;  %v331_v30 = vstv %s329_s29  ;;  %s695_s29 = sld [smem:[#allocation10 + $0x2]] }
 0x148   :  { %v464_v55 = vrot.slane %v463_v26, 1 }
 0x14a   :  { %v465_v42 = vadd.f32 %v464_v55, %v463_v26 }
 0x14c   :  { %708 = vpush %v465_v42 }
 0x150   :  { %v590_v29 = vpop.xlane.xlu0 %589 }
 0x151   :  { %v591_v35 = vrot.slane %v590_v29, 4 }
 0x153   :  { %v592_v46 = vadd.f32 %v591_v35, %v590_v29  ;;  %v617_v31 = vpop.xlane.xlu1 %616  ;;  %v484_v29 = vstv %s1197_s30 }
 0x154   :  { %v618_v16 = vrot.slane %v617_v31, 4 }
 0x155   :  { %v593_v32 = vrot.slane %v592_v46, 2 }
 0x156   :  { %v619_v34 = vadd.f32 %v618_v16, %v617_v31 }
 0x157   :  { %v594_v1 = vadd.f32 %v593_v32, %v592_v46 }
 0x158   :  { %v620_v13 = vrot.slane %v619_v34, 2 }
 0x159   :  { %v595_v22 = vrot.slane %v594_v1, 1 }
 0x15a   :  { %v621_v39 = vadd.f32 %v620_v13, %v619_v34 }
 0x15b   :  { %v596_v56 = vadd.f32 %v595_v22, %v594_v1 }
 0x15c   :  { %v622_v44 = vrot.slane %v621_v39, 1 }
 0x15d   :  { %710 = vpush %v596_v56 }
 0x15e   :  { %v623_v28 = vadd.f32 %v622_v44, %v621_v39 }
 0x160   :  { %712 = vpush %v623_v28 }
 0x173   :  { %s703_s24 = spop %702 }
 0x174   :  { %v283_v43 = vstv %s703_s24 }
 0x175   :  { %v311_v47 = vmul.f32 0.00025720164, %v283_v43 }
 0x176   :  { %s705_s25 = spop %704 }
 0x177   :  { %v313_v63 = vmul.f32 %v311_v47, %v311_v47  ;;  %v310_v59 = vstv %s705_s25  ;;  %s707_s26 = spop %706 }
 0x178   :  { %v312_v2 = vmul.f32 4.286694e-05, %v310_v59  ;;  %v440_v3 = vstv %s707_s26  ;;  %s694_s26 = sld [smem:[#allocation9 + $0x2]] }
 0x179   :  { %v1193_v45 = vmul.f32 0.00025720164, %v440_v3 }
 0x17a   :  { %v314_v38 = vsub.f32 %v312_v2, %v313_v63 }
 0x17b   :  { %v470_v49 = vmul.f32 %v1193_v45, %v1193_v45 }
 0x17c   :  { %v315_v53 = vadd.f32 1e-05, %v314_v38 }
 0x17d   :  { %s709_s27 = spop %708 }
 0x17e   :  { %723 = vrsqrt.f32 %v315_v53  ;;  %v467_v7 = vstv %s709_s27  ;;  %vm322_vm4 = vweird.f32 %v315_v53 }
 0x17f   :  { %v469_v58 = vmul.f32 4.286694e-05, %v467_v7 }
 0x181   :  { %v471_v60 = vsub.f32 %v469_v58, %v470_v49 }
 0x183   :  { %v472_v33 = vadd.f32 1e-05, %v471_v60 }
 0x184   :  { %v724_v61 = vpop.eup %723 }
 0x185   :  { %v317_v41 = vmul.f32 %v724_v61, %v315_v53  ;;  %725 = vrsqrt.f32 %v472_v33  ;;  %vm323_vm3 = vweird.f32 %v724_v61  ;;  %vm479_vm6 = vweird.f32 %v472_v33 }
 0x186   :  { %vm324_vm5 = vmor %vm322_vm4, %vm323_vm3 }
 0x187   :  { %v318_v50 = vmul.f32 %v724_v61, %v317_v41 }
 0x189   :  { %v319_v27 = vmul.f32 0.5, %v318_v50 }
 0x18b   :  { %v320_v40 = vsub.f32 1.5, %v319_v27  ;;  %v726_v54 = vpop.eup %725 }
 0x18c   :  { %v474_v18 = vmul.f32 %v726_v54, %v472_v33  ;;  %vm480_vm7 = vweird.f32 %v726_v54 }
 0x18d   :  { %v321_v0 = vmul.f32 %v724_v61, %v320_v40  ;;  %vm481_vm8 = vmor %vm479_vm6, %vm480_vm7 }
 0x18e   :  { %s711_s6 = spop %710  ;;  %v475_v24 = vmul.f32 %v726_v54, %v474_v18  ;;  %v646_v18 = vstv %s695_s29 }
 0x18f   :  { %v325_v15 = vsel %vm324_vm5, %v724_v61, %v321_v0  ;;  %v598_v9 = vstv %s711_s6 }
 0x190   :  { %v328_v8 = vmul.f32 %v327_v6, %v325_v15  ;;  %v1199_v52 = vmul.f32 0.00025720164, %v598_v9  ;;  %v476_v26 = vmul.f32 0.5, %v475_v24 }
 0x191   :  { %s713_s7 = spop %712 }
 0x192   :  { %v330_v55 = vmul.f32 %v328_v8, %v311_v47  ;;  %v333_v42 = vmul.f32 0.16666667, %v328_v8  ;;  %v477_v35 = vsub.f32 1.5, %v476_v26  ;;  %v628_v46 = vmul.f32 %v1199_v52, %v1199_v52 }
 0x193   :  { %v625_v31 = vstv %s713_s7 }
 0x194   :  { %v332_v32 = vsub.f32 %v331_v30, %v330_v55  ;;  %v334_v16 = vmul.f32 %v333_v42, %v991_v4  ;;  %v335_v1 = vmul.f32 %v333_v42, %v1052_v12  ;;  %v336_v34 = vmul.f32 %v333_v42, %v1058_v21 }
 0x195   :  { %v337_v13 = vmul.f32 %v333_v42, %v1076_v10  ;;  %v338_v22 = vmul.f32 %v333_v42, %v1088_v48  ;;  %v339_v39 = vmul.f32 %v333_v42, %v1090_v17  ;;  %v478_v56 = vmul.f32 %v726_v54, %v477_v35 }
 0x196   :  { %v340_v44 = vadd.f32 %v334_v16, %v332_v32  ;;  %v341_v28 = vadd.f32 %v335_v1, %v332_v32  ;;  %v342_v43 = vadd.f32 %v336_v34, %v332_v32  ;;  %v627_v47 = vmul.f32 4.286694e-05, %v625_v31 }
 0x197   :  { %v343_v63 = vadd.f32 %v337_v13, %v332_v32  ;;  %v482_v4 = vsel %vm481_vm8, %v726_v54, %v478_v56  ;;  %v344_v59 = vadd.f32 %v338_v22, %v332_v32  ;;  %v345_v10 = vadd.f32 %v339_v39, %v332_v32 }
 0x198   :  { %346 = vst.msk [vmem:[%s1305_s5] sm:$0xff] %vm84_vm0, %v340_v44  ;;  %v485_v12 = vmul.f32 %v484_v29, %v482_v4  ;;  %v629_v21 = vsub.f32 %v627_v47, %v628_v46  ;;  %v488_v48 = vstv %s1201_s2  ;;  %v642_v54 = vstv %s694_s26 }
 0x199   :  { %347 = vst.msk [vmem:[%s1305_s5 + $0x8] sm:$0xff] %vm84_vm0, %v341_v28 }
 0x19a   :  { %348 = vst.msk [vmem:[%s1305_s5 + $0x10] sm:$0x3] %vm87_vm1, %v342_v43  ;;  %v487_v17 = vmul.f32 %v485_v12, %v1193_v45  ;;  %v490_v2 = vmul.f32 0.16666667, %v485_v12  ;;  %v630_v38 = vadd.f32 1e-05, %v629_v21 }
 0x19b   :  { %349 = vst.msk [vmem:[%s1305_s5 + $0x48] sm:$0xff] %vm84_vm0, %v343_v63 }
 0x19c   :  { %350 = vst.msk [vmem:[%s1305_s5 + $0x50] sm:$0xff] %vm84_vm0, %v344_v59  ;;  %v489_v53 = vsub.f32 %v488_v48, %v487_v17  ;;  %v491_v3 = vmul.f32 %v490_v2, %v982_v62  ;;  %v492_v7 = vmul.f32 %v490_v2, %v1020_v36  ;;  %v493_v58 = vmul.f32 %v490_v2, %v1022_v37 }
 0x19d   :  { %351 = vst.msk [vmem:[%s1305_s5 + $0x58] sm:$0x3] %vm87_vm1, %v345_v10  ;;  %v494_v45 = vmul.f32 %v490_v2, %v1073_v51  ;;  %v495_v49 = vmul.f32 %v490_v2, %v1082_v20  ;;  %v496_v60 = vmul.f32 %v490_v2, %v1084_v19  ;;  %727 = vrsqrt.f32 %v630_v38 }
 0x19e   :  { %v497_v61 = vadd.f32 %v491_v3, %v489_v53  ;;  %v498_v33 = vadd.f32 %v492_v7, %v489_v53  ;;  %v499_v41 = vadd.f32 %v493_v58, %v489_v53  ;;  %vm637_vm10 = vweird.f32 %v630_v38 }
 0x19f   :  { %v500_v62 = vadd.f32 %v494_v45, %v489_v53  ;;  %v501_v50 = vadd.f32 %v495_v49, %v489_v53  ;;  %v502_v36 = vadd.f32 %v496_v60, %v489_v53 }
 0x1a0   :  { %684 = vst.msk [vmem:[%s1305_s5 + $0x18] sm:$0xff] %vm84_vm0, %v497_v61 }
 0x1a1   :  { %685 = vst.msk [vmem:[%s1305_s5 + $0x20] sm:$0xff] %vm84_vm0, %v498_v33 }
 0x1a2   :  { %686 = vst.msk [vmem:[%s1305_s5 + $0x28] sm:$0x3] %vm87_vm1, %v499_v41 }
 0x1a3   :  { %v728_v37 = vpop.eup %727  ;;  %687 = vst.msk [vmem:[%s1305_s5 + $0x60] sm:$0xff] %vm84_vm0, %v500_v62 }
 0x1a4   :  { %688 = vst.msk [vmem:[%s1305_s5 + $0x68] sm:$0xff] %vm84_vm0, %v501_v50  ;;  %v632_v51 = vmul.f32 %v728_v37, %v630_v38  ;;  %vm638_vm9 = vweird.f32 %v728_v37 }
 0x1a5   :  { %689 = vst.msk [vmem:[%s1305_s5 + $0x70] sm:$0x3] %vm87_vm1, %v502_v36  ;;  %vm639_vm11 = vmor %vm637_vm10, %vm638_vm9 }
 0x1a6   :  { %v633_v20 = vmul.f32 %v728_v37, %v632_v51 }
 0x1a8   :  { %v634_v19 = vmul.f32 0.5, %v633_v20 }
 0x1aa   :  { %v635_v27 = vsub.f32 1.5, %v634_v19 }
 0x1ac   :  { %v636_v40 = vmul.f32 %v728_v37, %v635_v27 }
 0x1ae   :  { %v640_v0 = vsel %vm639_vm11, %v728_v37, %v636_v40 }
 0x1af   :  { %v643_v6 = vmul.f32 %v642_v54, %v640_v0 }
 0x1b1   :  { %v645_v15 = vmul.f32 %v643_v6, %v1199_v52  ;;  %v648_v24 = vmul.f32 0.16666667, %v643_v6 }
 0x1b3   :  { %v647_v9 = vsub.f32 %v646_v18, %v645_v15  ;;  %v649_v8 = vmul.f32 %v648_v24, %v1151_v23  ;;  %v650_v30 = vmul.f32 %v648_v24, %v1153_v5  ;;  %v651_v26 = vmul.f32 %v648_v24, %v1155_v25 }
 0x1b4   :  { %v652_v55 = vmul.f32 %v648_v24, %v1157_v11  ;;  %v653_v42 = vmul.f32 %v648_v24, %v1159_v14  ;;  %v654_v29 = vmul.f32 %v648_v24, %v1177_v57 }
 0x1b5   :  { %v655_v35 = vadd.f32 %v649_v8, %v647_v9  ;;  %v656_v46 = vadd.f32 %v650_v30, %v647_v9  ;;  %v657_v31 = vadd.f32 %v651_v26, %v647_v9 }
 0x1b6   :  { %v658_v32 = vadd.f32 %v652_v55, %v647_v9  ;;  %v659_v16 = vadd.f32 %v653_v42, %v647_v9  ;;  %v660_v23 = vadd.f32 %v654_v29, %v647_v9 }
 0x1b7   :  { %696 = vst.msk [vmem:[%s1305_s5 + $0x30] sm:$0xff] %vm84_vm0, %v655_v35 }
 0x1b8   :  { %697 = vst.msk [vmem:[%s1305_s5 + $0x38] sm:$0xff] %vm84_vm0, %v656_v46 }
 0x1b9   :  { %698 = vst.msk [vmem:[%s1305_s5 + $0x40] sm:$0x3] %vm87_vm1, %v657_v31 }
 0x1ba   :  { %699 = vst.msk [vmem:[%s1305_s5 + $0x78] sm:$0xff] %vm84_vm0, %v658_v32 }
 0x1bb   :  { %700 = vst.msk [vmem:[%s1305_s5 + $0x80] sm:$0xff] %vm84_vm0, %v659_v16 }
 0x1bc   :  { %701 = vst.msk [vmem:[%s1305_s5 + $0x88] sm:$0x3] %vm87_vm1, %v660_v23 }
 0x1bd   :  { %672 = vsyncpa [#allocation4], 1 }
 0x1be   :  { %673 = vsyncpa [#allocation5], 1 }
 0x1bf   :  { %674 = vsyncpa [#allocation8], 1 }
 0x1c0   :  { %675 = vsyncpa [#allocation11], 1 }

</bundles_post_ra>
